<compile_context>
chip_gen: v6e
topology: v6e:2x2x1
jax: 0.10.0
libtpu: 0.0.40
codegen_flags: <defaults>
</compile_context>

<pallas_src>
import jax
import jax.numpy as jnp
from jax.experimental import pallas as pl
from jax.experimental.pallas import tpu as pltpu

SQRT_2 = 1.4142135623730951


def _cdiv(a, b):
    return (a + b - 1) // b


def _round_up(n, m):
    return ((n + m - 1) // m) * m


def _maybe_pad_dim(n):
    # Pad to a lane multiple only when the dim is at least one vreg wide and
    # unaligned; small dims stay as-is (full-array block dims are always legal
    # and padding them only adds HBM traffic).
    if n % 128 == 0 or n < 128:
        return n
    return _round_up(n, 128)


def _get_vmem_capacity_bytes():
    try:
        return int(pltpu.get_tpu_info().vmem_capacity_bytes)
    except Exception:
        return 64 * 1024 * 1024  # conservative (v7x per-TC physical)


def _choose_tm(M, Dp, Hp, x_itemsize, w_itemsize, vmem_cap, tm_max):
    """Pick a row-tile size that balances tiles, feeds 2 TCs, and fits VMEM."""
    # At least 2 grid steps when there is enough work (v7x has 2 TensorCores
    # sharing the 'parallel' grid axis); otherwise a single block.
    n_steps = max(_cdiv(M, tm_max), 2 if M >= 16 else 1)
    tm = _round_up(_cdiv(M, n_steps), 8)
    tm = min(tm, _round_up(M, 8))

    weights = 2 * Dp * Hp * w_itemsize + (Hp + Dp) * 4  # single-buffered W1,W2,b1,b2

    def resident(tm_):
        tiles = 2 * 2 * tm_ * Dp * x_itemsize  # x + out, double-buffered
        inter = 2 * tm_ * Hp * 4                # h and g intermediates (f32)
        return weights + tiles + inter

    budget = int(0.6 * vmem_cap)
    while tm > 8 and resident(tm) > budget:
        tm = _round_up(tm // 2, 8)
    # TODO(synk): add an inner H-tiled pipeline (emit_pipeline over Hp blocks)
    # for configs where the full weights alone exceed the VMEM budget.
    return tm, resident(tm)


def _residual_mlp_kernel(x_ref, w1_ref, b1_ref, w2_ref, b2_ref, o_ref):
    x = x_ref[...]
    xf = x.astype(jnp.float32)
    mxu_dt = w1_ref.dtype  # f32 by default; bf16 when use_bf16_weights=True
    # First linear: (tm, Dp) @ (Dp, Hp) + (1, Hp) -> f32 accumulator.
    h = jnp.dot(x.astype(mxu_dt), w1_ref[...],
                preferred_element_type=jnp.float32) + b1_ref[...]
    # Exact (erf-based) GELU, matching torch.nn.GELU() default; erf -> EUP.
    g = 0.5 * h * (1.0 + jax.lax.erf(h * (1.0 / SQRT_2)))
    # Second linear: (tm, Hp) @ (Hp, Dp) + (1, Dp).
    y = jnp.dot(g.astype(mxu_dt), w2_ref[...],
                preferred_element_type=jnp.float32) + b2_ref[...]
    # Residual: fn(x) + x, on the VPU with x already resident in VMEM.
    o_ref[...] = (y + xf).astype(o_ref.dtype)


def residual_mlp_forward(x, w1, b1, w2, b2, *, tm_max=512, use_bf16_weights=False):
    """Computes GELU(x @ w1 + b1) @ w2 + b2 + x over the last dim of x.

    x: (..., D); w1: (D, H); b1: (H,); w2: (H, D); b2: (D,).
    """
    orig_shape = x.shape
    D = x.shape[-1]
    H = w1.shape[1]
    x2 = x.reshape(-1, D)
    M = x2.shape[0]

    Dp = _maybe_pad_dim(D)
    Hp = _maybe_pad_dim(H)

    w_dtype = jnp.bfloat16 if use_bf16_weights else w1.dtype
    x_itemsize = jnp.dtype(x.dtype).itemsize
    w_itemsize = jnp.dtype(w_dtype).itemsize

    # Only materialize padded / recast copies when actually needed.
    xp = x2 if Dp == D else jnp.zeros((M, Dp), x.dtype).at[:, :D].set(x2)
    if Dp != D or Hp != H or w_dtype != w1.dtype:
        w1p = jnp.zeros((Dp, Hp), w_dtype).at[:D, :H].set(w1.astype(w_dtype))
        w2p = jnp.zeros((Hp, Dp), w_dtype).at[:H, :D].set(w2.astype(w_dtype))
    else:
        w1p, w2p = w1, w2
    if Hp != H:
        b1p = jnp.zeros((1, Hp), jnp.float32).at[0, :H].set(b1.astype(jnp.float32))
    else:
        b1p = b1.astype(jnp.float32).reshape(1, Hp)
    if Dp != D:
        b2p = jnp.zeros((1, Dp), jnp.float32).at[0, :D].set(b2.astype(jnp.float32))
    else:
        b2p = b2.astype(jnp.float32).reshape(1, Dp)

    vmem_cap = _get_vmem_capacity_bytes()
    tm, resident = _choose_tm(M, Dp, Hp, x_itemsize, w_itemsize, vmem_cap, tm_max)
    grid = (_cdiv(M, tm),)  # last block may be partial; Pallas masks the edge

    single_buf = pl.Buffered(1)  # grid-invariant operands: no double-buffering

    compiler_kwargs = dict(dimension_semantics=("parallel",))
    if resident > 16 * 1024 * 1024:  # above v5e's scoped-VMEM default
        compiler_kwargs["vmem_limit_bytes"] = min(
            int(resident * 1.5), int(0.9 * vmem_cap))

    cost = pl.CostEstimate(
        flops=int(4 * M * Dp * Hp),
        transcendentals=int(M * Hp),
        bytes_accessed=int(2 * M * Dp * x_itemsize
                           + 2 * Dp * Hp * w_itemsize + (Hp + Dp) * 4),
    )

    out = pl.pallas_call(
        _residual_mlp_kernel,
        out_shape=jax.ShapeDtypeStruct((M, Dp), x.dtype),
        grid_spec=pltpu.PrefetchScalarGridSpec(
            num_scalar_prefetch=0,
            grid=grid,
            in_specs=[
                pl.BlockSpec((tm, Dp), lambda i: (i, 0)),        # x rows
                pl.BlockSpec((Dp, Hp), lambda i: (0, 0),
                             pipeline_mode=single_buf),          # W1 (full)
                pl.BlockSpec((1, Hp), lambda i: (0, 0),
                             pipeline_mode=single_buf),          # b1
                pl.BlockSpec((Hp, Dp), lambda i: (0, 0),
                             pipeline_mode=single_buf),          # W2 (full)
                pl.BlockSpec((1, Dp), lambda i: (0, 0),
                             pipeline_mode=single_buf),          # b2
            ],
            out_specs=pl.BlockSpec((tm, Dp), lambda i: (i, 0)),
        ),
        compiler_params=pltpu.CompilerParams(**compiler_kwargs),
        cost_estimate=cost,
    )(xp, w1p, b1p, w2p, b2p)

    if Dp != D:
        out = out[:, :D]
    return out.reshape(orig_shape)


def _reference(x, w1, b1, w2, b2):
    h = x @ w1 + b1
    g = 0.5 * h * (1.0 + jax.lax.erf(h / SQRT_2))
    return g @ w2 + b2 + x


if __name__ == "__main__":
    # Small shapes for the correctness check only; at these sizes a fused XLA
    # MLP is faster than any pallas_call (fixed ~600-cycle/step overhead).
    out_dim = 32     # input & output width of the wrapped MLP
    hidden_dim = 64
    batch, seq = 2, 8

    key = jax.random.PRNGKey(0)
    kx, k1, k2, k3, k4 = jax.random.split(key, 5)

    # Deterministic synthetic parameters (PyTorch-Linear-style uniform init).
    lim1 = 1.0 / (out_dim ** 0.5)
    lim2 = 1.0 / (hidden_dim ** 0.5)
    w1 = jax.random.uniform(k1, (out_dim, hidden_dim), jnp.float32, -lim1, lim1)
    b1 = jax.random.uniform(k2, (hidden_dim,), jnp.float32, -lim1, lim1)
    w2 = jax.random.uniform(k3, (hidden_dim, out_dim), jnp.float32, -lim2, lim2)
    b2 = jax.random.uniform(k4, (out_dim,), jnp.float32, -lim2, lim2)

    x = jax.random.normal(kx, (batch, seq, out_dim), jnp.float32)

    y = residual_mlp_forward(x, w1, b1, w2, b2)
    y = jax.block_until_ready(y)

    y_ref = _reference(x.reshape(-1, out_dim), w1, b1, w2, b2).reshape(x.shape)
    assert jnp.allclose(y, y_ref, atol=1e-5, rtol=1e-5), "mismatch vs reference"

    print("KERNEL_OK")
</pallas_src>

<mosaic_0001>
module attributes {stable_mosaic.version = 11 : i64} {
  func.func @_residual_mlp_kernel(%arg0: i32, %arg1: memref<8x32xf32, #tpu.memory_space<vmem>>, %arg2: memref<32x64xf32, #tpu.memory_space<vmem>>, %arg3: memref<1x64xf32, #tpu.memory_space<vmem>>, %arg4: memref<64x32xf32, #tpu.memory_space<vmem>>, %arg5: memref<1x32xf32, #tpu.memory_space<vmem>>, %arg6: memref<8x32xf32, #tpu.memory_space<vmem>>) attributes {dimension_semantics = [#tpu.dimension_semantics<parallel>], iteration_bounds = array<i64: 2>, scalar_prefetch = 0 : i64, scratch_operands = 0 : i64, tpu.core_type = #tpu.core_type<tc>, window_params = [{transform_indices = @transform_0, window_bounds = array<i64: 8, 32>}, {pipeline_mode = #tpu.pipeline_mode<synchronous>, transform_indices = @transform_1, window_bounds = array<i64: 32, 64>}, {pipeline_mode = #tpu.pipeline_mode<synchronous>, transform_indices = @transform_2, window_bounds = array<i64: 1, 64>}, {pipeline_mode = #tpu.pipeline_mode<synchronous>, transform_indices = @transform_3, window_bounds = array<i64: 64, 32>}, {pipeline_mode = #tpu.pipeline_mode<synchronous>, transform_indices = @transform_4, window_bounds = array<i64: 1, 32>}, {transform_indices = @transform_5, window_bounds = array<i64: 8, 32>}]} {
    %c0 = arith.constant 0 : index
    %c0_0 = arith.constant 0 : index
    %0 = vector.load %arg1[%c0, %c0_0] : memref<8x32xf32, #tpu.memory_space<vmem>>, vector<8x32xf32>
    %c0_1 = arith.constant 0 : index
    %c0_2 = arith.constant 0 : index
    %1 = vector.load %arg2[%c0_1, %c0_2] : memref<32x64xf32, #tpu.memory_space<vmem>>, vector<32x64xf32>
    %cst = arith.constant dense<0.000000e+00> : vector<8x64xf32>
    %2 = tpu.matmul %0, %1, %cst {dimension_numbers = #tpu.dot_dimension_numbers<[1], [0], [0], [1], [0, 0, 1, 1], [], []>} : vector<8x32xf32>, vector<32x64xf32>, vector<8x64xf32> -> vector<8x64xf32>
    %c0_3 = arith.constant 0 : index
    %c0_4 = arith.constant 0 : index
    %3 = vector.load %arg3[%c0_3, %c0_4] : memref<1x64xf32, #tpu.memory_space<vmem>>, vector<1x64xf32>
    %4 = vector.broadcast %3 : vector<1x64xf32> to vector<8x64xf32>
    %5 = arith.addf %2, %4 : vector<8x64xf32>
    %cst_5 = arith.constant 5.000000e-01 : f32
    %6 = vector.broadcast %cst_5 : f32 to vector<8x64xf32>
    %7 = arith.mulf %6, %5 : vector<8x64xf32>
    %cst_6 = arith.constant 0.707106769 : f32
    %8 = vector.broadcast %cst_6 : f32 to vector<8x64xf32>
    %9 = arith.mulf %5, %8 : vector<8x64xf32>
    %10 = math.erf %9 : vector<8x64xf32>
    %cst_7 = arith.constant 1.000000e+00 : f32
    %11 = vector.broadcast %cst_7 : f32 to vector<8x64xf32>
    %12 = arith.addf %11, %10 : vector<8x64xf32>
    %13 = arith.mulf %7, %12 : vector<8x64xf32>
    %c0_8 = arith.constant 0 : index
    %c0_9 = arith.constant 0 : index
    %14 = vector.load %arg4[%c0_8, %c0_9] : memref<64x32xf32, #tpu.memory_space<vmem>>, vector<64x32xf32>
    %cst_10 = arith.constant dense<0.000000e+00> : vector<8x32xf32>
    %15 = tpu.matmul %13, %14, %cst_10 {dimension_numbers = #tpu.dot_dimension_numbers<[1], [0], [0], [1], [0, 0, 1, 1], [], []>} : vector<8x64xf32>, vector<64x32xf32>, vector<8x32xf32> -> vector<8x32xf32>
    %c0_11 = arith.constant 0 : index
    %c0_12 = arith.constant 0 : index
    %16 = vector.load %arg5[%c0_11, %c0_12] : memref<1x32xf32, #tpu.memory_space<vmem>>, vector<1x32xf32>
    %17 = vector.broadcast %16 : vector<1x32xf32> to vector<8x32xf32>
    %18 = arith.addf %15, %17 : vector<8x32xf32>
    %19 = arith.addf %18, %0 : vector<8x32xf32>
    %c0_13 = arith.constant 0 : index
    %c0_14 = arith.constant 0 : index
    %20 = vector.load %arg6[%c0_13, %c0_14] : memref<8x32xf32, #tpu.memory_space<vmem>>, vector<8x32xf32>
    tpu.vector_store %arg6[%c0_13, %c0_14], %19 {strides = array<i32>} : memref<8x32xf32, #tpu.memory_space<vmem>>, vector<8x32xf32>,
    return
  }
  func.func @transform_0(%arg0: i32) -> (i32, i32) {
    %c0_i32 = arith.constant 0 : i32
    %c0_i32_0 = arith.constant 0 : i32
    return %arg0, %c0_i32 : i32, i32
  }
  func.func @transform_1(%arg0: i32) -> (i32, i32) {
    %c0_i32 = arith.constant 0 : i32
    %c0_i32_0 = arith.constant 0 : i32
    %c0_i32_1 = arith.constant 0 : i32
    return %c0_i32, %c0_i32_0 : i32, i32
  }
  func.func @transform_2(%arg0: i32) -> (i32, i32) {
    %c0_i32 = arith.constant 0 : i32
    %c0_i32_0 = arith.constant 0 : i32
    %c0_i32_1 = arith.constant 0 : i32
    return %c0_i32, %c0_i32_0 : i32, i32
  }
  func.func @transform_3(%arg0: i32) -> (i32, i32) {
    %c0_i32 = arith.constant 0 : i32
    %c0_i32_0 = arith.constant 0 : i32
    %c0_i32_1 = arith.constant 0 : i32
    return %c0_i32, %c0_i32_0 : i32, i32
  }
  func.func @transform_4(%arg0: i32) -> (i32, i32) {
    %c0_i32 = arith.constant 0 : i32
    %c0_i32_0 = arith.constant 0 : i32
    %c0_i32_1 = arith.constant 0 : i32
    return %c0_i32, %c0_i32_0 : i32, i32
  }
  func.func @transform_5(%arg0: i32) -> (i32, i32) {
    %c0_i32 = arith.constant 0 : i32
    %c0_i32_0 = arith.constant 0 : i32
    return %arg0, %c0_i32 : i32, i32
  }
}

</mosaic_0001>

<bundles_post_ra>
// kernel: tpu_custom_call.1
= control target key start
LH: loop header
LB: loop body
LE: loop exit
PB: predicated region body
PF: predicated region fallthrough
CT: control target
= control target key end

     0   :  { %10 = vsyncpa [#allocation3], 0  ;;  %s802_s0 = inlined_call_operand.vmem [shape: f32[16,32], index: 0, kind: input, shape index: {}]   ;;  %s803_s1 = inlined_call_operand.vmem [shape: f32[32,64], index: 1, kind: input, shape index: {}]   ;;  %s804_s2 = inlined_call_operand.vmem [shape: f32[1,64], index: 2, kind: input, shape index: {}]   ;;  %s805_s3 = inlined_call_operand.vmem [shape: f32[64,32], index: 3, kind: input, shape index: {}]   ;;  %s806_s4 = inlined_call_operand.vmem [shape: f32[1,32], index: 4, kind: input, shape index: {}]   ;;  %s807_s5 = inlined_call_operand.hbm [shape: f32[16,32], index: 5, kind: output, shape index: {}]  }
   0x1   :  { %12 = vsyncpa [#allocation3 + $0x1], 0  ;;  %s671_s18 = smov 0   ;;  %s673_s19 = smov 0  }
   0x2   :  { %s675_s20 = smov 0   ;;  %s677_s21 = smov 0  }
   0x3 LB: > { %s692_s22 = sadd.s32 4294967295, %s636_s21   ;;  %s475_s23 = sadd.s32 4294967294, %s636_s21   ;;  %s636_s21 = sphi %s677_s21, %s813_s21   ;;  %s632_s20 = sphi %s675_s20, %s812_s20   ;;  %s628_s19 = sphi %s673_s19, %s811_s19   ;;  %s624_s18 = sphi %s671_s18, %s810_s18  }
   0x4   : > { %s696_s24 = sadd.s32 1, %s636_s21   ;;  %s135_s25 = sadd.s32 1, %s632_s20 }
   0x5   : > { %s132_s26 = ssub.s32 %s636_s21, %s696_s24  ;;  %p145_p0 = scmp.ne.s32.totalorder %s632_s20, %s628_s19 }
   0x6   : > { %p133_p1 = scmp.eq.s32.totalorder %s132_s26, 0  ;;  %p146_p2 = scmp.eq.s32.totalorder %s692_s22, 1 }
   0x7   : > { %p151_p3 = scmp.ne.s32.totalorder %s628_s19, %s624_s18  ;;  %p152_p4 = scmp.eq.s32.totalorder %s475_s23, 1 }
   0x8   : > { %s707_s27 = scalar_select %p133_p1, %s632_s20, %s135_s25  }
   0x9   : > { %p709_p5 = por %p146_p2, %p145_p0  ;;  %p713_p6 = por %p152_p4, %p151_p3 }
   0xa   : > { %p478_p7 = scmp.ge.s32.totalorder %s636_s21, 1  ;;  %p189_p8 = scmp.lt.s32.totalorder %s636_s21, 3 }
   0xc   : > { %p190_p9 = pnand %p478_p7, %p189_p8 }
   0xd   : > { %p216_p10 = scmp.lt.s32.totalorder (!%p190_p9), %s692_s22, 1  ;;  %s213_s26 = sand.u32 (!%p190_p9), 1, %s628_s19  }
   0xe   : > { %193 = sbr.rel (%p190_p9) target bundleno = 453 (0x1c5), region = 40  ;;  %s479_s30 = sshll.u32 (!%p190_p9), %s213_s26, 3 }
   0xf   : > { %s486_s8 = sshll.u32 (!%p190_p9), %s692_s22, 7  ;;  %s403_s14 = scalar_lea.sflag (!%p190_p9), [#allocation3], %s213_s26 }
  0x10   : > { %s414_s13 = scalar_lea.hbm (!%p190_p9), %s807_s5, %s486_s8  ;;  %s640_s16 = smov (!%p190_p9), [#allocation2]  }
  0x13   : > { %v224_v0 = vld [vmem:[%s803_s1 + $0x18] sm:$0xff]  ;;  %v638_v1 = vmov 0.0   ;;  %v223_v2 = vld [vmem:[%s803_s1 + $0x10] sm:$0xff]  ;;  %vm639_vm0 = vmmov 0   ;;  %s217_s9 = scalar_select %p216_p10, %s692_s22, 1  ;;  %v222_v3 = vld [vmem:[%s803_s1 + $0x8] sm:$0xff] }
  0x14   : > { %503 = vmatprep.subr.mxu0 %v638_v1  ;;  %511 = vmatprep.mubr.msk.f32.mxu0 %vm639_vm0, %v638_v1  ;;  %v221_v4 = vld [vmem:[%s803_s1] sm:$0xff]  ;;  %vm232_vm1 = vcmask 261120   ;;  %v318_v6 = vld [vmem:[%s805_s3 + $0x38] sm:$0xff]  ;;  %v317_v7 = vld [vmem:[%s805_s3 + $0x30] sm:$0xff]  ;;  %vm326_vm2 = vcmask 523264   ;;  %s580_s22 = sshll.u32 %s640_s16, 4  ;;  %s581_s22 = int_to_ptr.vmem [resolvable:$false] %s580_s22 }
  0x15   : > { %504 = vmatpush3.msra.mxu0 %v224_v0  ;;  %514 = vmatprep.subr.mxu1 %v638_v1  ;;  %s480_s12 = sshll.u32 %s217_s9, 3  ;;  %v316_v8 = vld [vmem:[%s805_s3 + $0x28] sm:$0xff]  ;;  %v315_v9 = vld [vmem:[%s805_s3 + $0x20] sm:$0xff]  ;;  %v314_v10 = vld [vmem:[%s805_s3 + $0x18] sm:$0xff]  ;;  %s215_s9 = scalar_lea.vmem [#allocation2], %s479_s30 }
  0x16   : > { %505 = vmatprep.subr.mxu0 %v638_v1  ;;  %530 = vmatprep.mubr.msk.f32.mxu1 %vm639_vm0, %v638_v1  ;;  %s219_s17 = scalar_lea.vmem %s802_s0, %s480_s12  ;;  %v313_v11 = vld [vmem:[%s805_s3 + $0x10] sm:$0xff]  ;;  %v312_v12 = vld [vmem:[%s805_s3 + $0x8] sm:$0xff]  ;;  %v311_v13 = vld [vmem:[%s805_s3] sm:$0xff]  ;;  %s416_s10 = sshll.u32 %s215_s9, 4  ;;  %s417_s10 = int_to_ptr.vmem [resolvable:$true] %s416_s10 }
  0x17   : > { %506 = vmatpush3.msra.mxu0 %v223_v2  ;;  %v220_v5 = vld [vmem:[%s219_s17] sm:$0xff]  ;;  %515 = vmatpush3.msra.mxu1 %v318_v6  ;;  %s576_s15 = scalar_lea.vmem %s417_s10, 128  ;;  %s582_s17 = scalar_lea.vmem %s581_s22, 256 }
  0x18   : > { %507 = vmatprep.subr.mxu0 %v638_v1  ;;  %516 = vmatprep.subr.mxu1 %v638_v1  ;;  %v481_v14 = vld [vmem:[%s804_s2] ss:$0 sm:$0xff]  ;;  %p577_p11 = scmp.ne.s32.totalorder %s417_s10, %s576_s15  ;;  %p583_p0 = scmp.lt.s32.totalorder %s417_s10, %s581_s22 }
  0x19   : > { %508 = vmatpush3.msra.mxu0 %v222_v3  ;;  %517 = vmatpush3.msra.mxu1 %v317_v7  ;;  %v483_v23 = vld [vmem:[%s806_s4] ss:$0 sm:$0xff]  ;;  %p584_p1 = scmp.lt.s32.totalorder %s582_s17, %s576_s15 }
  0x1a   : > { %509 = vmatprep.subr.mxu0 %v638_v1  ;;  %518 = vmatprep.subr.mxu1 %v638_v1  ;;  %p578_p12 = pnand %p577_p11, %p709_p5 }
  0x1b   : > { %510 = vmatpush3.msra.mxu0 %v221_v4  ;;  %519 = vmatpush3.msra.mxu1 %v316_v8  ;;  %p585_p2 = por %p584_p1, %p583_p0 }
  0x1c   : > { %512 = vmatmul.mubr.msk.f32.vlgmr.msra.gmra.mxu0 %vm232_vm1, %v220_v5  ;;  %520 = vmatprep.subr.mxu1 %v638_v1  ;;  %p579_p13 = pneg %p578_p12 }
  0x1d   : > { %521 = vmatpush3.msra.mxu1 %v315_v9 }
  0x1e   : > { %522 = vmatprep.subr.mxu1 %v638_v1  ;;  %p586_p3 = pnand %p585_p2, %p579_p13 }
  0x1f   : > { %523 = vmatpush3.msra.mxu1 %v314_v10 }
  0x20   : > { %524 = vmatprep.subr.mxu1 %v638_v1 }
  0x21   : > { %525 = vmatpush3.msra.mxu1 %v313_v11 }
  0x22   : > { %526 = vmatprep.subr.mxu1 %v638_v1 }
  0x23   : > { %527 = vmatpush3.msra.mxu1 %v312_v12 }
  0x24   : > { %528 = vmatprep.subr.mxu1 %v638_v1 }
  0x25   : > { %529 = vmatpush3.msra.mxu1 %v311_v13 }
  0xdc   : > { %v302_v15 = vpop.f32.mrf.mxu0 }
  0xdd   : > { %v303_v16 = vadd.f32 %v481_v14, %v302_v15 }
  0xde   : > { %v513_v17 = vpop.f32.mrf.mxu0 }
  0xdf   : > { %v307_v18 = vmul.f32 0.70710677, %v303_v16  ;;  %v306_v20 = vmul.f32 0.5, %v303_v16 }
  0xe1   : > { %574 = verf.f32 %v307_v18 }
  0xee   : > { %v575_v19 = vpop.eup %574 }
  0xef   : > { %v309_v21 = vadd.f32 1.0, %v575_v19 }
  0xf1   : > { %v310_v22 = vmul.f32 %v309_v21, %v306_v20 }
  0xf3   : > { %531 = vmatmul.mubr.msk.f32.vlgmr.msra.gmra.mxu1 %vm326_vm2, %v310_v22 }
 0x1b3   : > { %v396_v24 = vpop.f32.mrf.mxu1 }
 0x1b4   : > { %v397_v25 = vadd.f32 %v483_v23, %v396_v24 }
 0x1b5   : > { %v532_v26 = vpop.f32.mrf.mxu1 }
 0x1b6   : > { %v400_v27 = vadd.f32 %v397_v25, %v220_v5 }
 0x1b8   : > { %401 = vst.msk [vmem:[%s215_s9] sm:$0xff] %vm232_vm1, %v400_v27 }
 0x1b9   : > { %589 = shalt.err (!%p586_p3)
}
 0x1ba   : > { %s590_s23 = scalar_lea.hbm %s414_s13, 128  ;;  %s594_s30 = scalar_lea.hbm %s807_s5, 256 }
 0x1bb   : > { %p591_p4 = scmp.ne.s32.totalorder %s414_s13, %s590_s23  ;;  %p595_p9 = scmp.lt.s32.totalorder %s414_s13, %s807_s5 }
 0x1bc   : > { %p596_p10 = scmp.lt.s32.totalorder %s594_s30, %s590_s23 }
 0x1bd   : > { %p592_p7 = pnand %p591_p4, %p709_p5 }
 0x1be   : > { %p597_p11 = por %p596_p10, %p595_p9 }
 0x1bf   : > { %p593_p8 = pneg %p592_p7 }
 0x1c1   : > { %p598_p12 = pnand %p597_p11, %p593_p8 }
 0x1c3   : > { %601 = shalt.err (!%p598_p12)
}
 0x1c4   : > { %533 = dma.vmem_to_hbm [thread:$0]  (%p709_p5), %s417_s10, 128, %s414_s13, %s403_s14  }
 0x1c5 PF: > { %p539_p13 = scmp.ge.s32.totalorder %s636_s21, 2  ;;  %s428_s8 = sand.u32 1, %s624_s18  }
 0x1c6   : > { %s429_s9 = scalar_lea.sflag [#allocation3], %s428_s8 }
 0x1c7   : > { %p536_p0 = pnand %p539_p13, %p713_p6 }
 0x1c9   : > { %p537_p1 = pneg %p536_p0 }
 0x1cb   : > { %619 = dma.done.wait (%p537_p1), %s429_s9, 128  }
 0x1cc   : > { %621 = vsyncadd (%p537_p1), %s429_s9, 4294967168  ;;  %p15_p2 = scmp.ge.s32.totalorder %s696_s24, 4   ;;  %s810_s18 = smov %s628_s19 }
 0x1cd   : > { %s811_s19 = smov %s632_s20  ;;  %s812_s20 = smov %s707_s27 }
 0x1ce   : > { %s813_s21 = smov %s696_s24  ;;  %17 = sbr.rel (!%p15_p2) target bundleno = 3 (0x3), region = 75 }
 0x1d3   :  { %434 = vsyncpa [#allocation3], 1 }
 0x1d4   :  { %436 = vsyncpa [#allocation3 + $0x1], 1 }

</bundles_post_ra>
